<compile_context>
chip_gen: v5e
topology: v5e:2x2
jax: 0.10.0
libtpu: 0.0.40
codegen_flags: <defaults>
</compile_context>

<pallas_src>
import functools

import jax
import jax.numpy as jnp
from jax.experimental import pallas as pl
from jax.experimental.pallas import tpu as pltpu


def _round_up(x, m):
    return ((x + m - 1) // m) * m


def make_gat_stack_kernel(num_layers, h_dim):
    """Kernel running the whole GAT layer stack on a VMEM-resident graph.

    Ref order (matches pallas_call argument order):
      h_ref    : [N, in_dim] f32   node attributes (g.ndata['attr'])
      adjt_ref : [N, N]      f32   adjt[v, u] = 1.0 iff edge u -> v
                                   (dst on sublanes, src on lanes)
      w_refs   : num_layers augmented weights, bf16
                   layer 0 : [in_dim, F_PAD]
                   layer>0 : [F_PAD, F_PAD]  (rows >= h_dim are zero, so the
                             padded hidden state feeds straight back in)
                 columns: [:h_dim] = W, [h_dim] = W@a_src, [h_dim+1] = W@a_dst,
                 remaining lanes zero-padded up to F_PAD (multiple of 128).
      out_ref  : [N, F_PAD]  f32   (caller slices [:, :h_dim])
    """

    def kernel(*refs):
        h_ref, adjt_ref = refs[0], refs[1]
        w_refs = refs[2:2 + num_layers]
        out_ref = refs[2 + num_layers]

        # Adjacency mask is layer-invariant: load and compare once.
        mask = adjt_ref[...] > 0.0                         # [N, N] bool
        neg_inf = jnp.float32(-1e30)

        h = h_ref[...]                                     # [N, F_in] f32
        for li in range(num_layers):                       # static unroll; h stays on-chip
            w = w_refs[li][...]                            # bf16
            # One fused MXU matmul -> z | s | d  (f32 accumulation).
            zaug = jnp.dot(h.astype(jnp.bfloat16), w,
                           preferred_element_type=jnp.float32)      # [N, F_PAD]
            s = zaug[:, h_dim:h_dim + 1]                   # [N, 1]  a_src . z_u
            d = zaug[:, h_dim + 1:h_dim + 2]               # [N, 1]  a_dst . z_v

            # e[v, u] = leaky_relu(s[u] + d[v]); only a tiny [N,1]->[1,N] vector
            # transpose is needed (the old full [N,N] alpha transpose is gone).
            e = d + jnp.transpose(s)                       # [N, N]
            e = jnp.where(e > 0, e, 0.01 * e)              # F.leaky_relu, slope 0.01
            e = jnp.where(mask, e, neg_inf)

            # Masked softmax over incoming edges = lane-axis reduction.
            # exp(-1e30 - max) underflows to exactly 0, so no second masking
            # pass is needed (every node is assumed to have >= 1 incoming edge,
            # e.g. self loops, as DGL's GAT requires).
            e_max = jnp.max(e, axis=-1, keepdims=True)     # [N, 1]
            p = jnp.exp(e - e_max)                         # [N, N] f32
            denom = jnp.sum(p, axis=-1, keepdims=True)     # [N, 1]
            alpha = p * (1.0 / denom)                      # [N, N]

            # h'_v = sum_u alpha[v, u] * z_u == alpha @ z  (MXU, bf16 in / f32 acc).
            # We aggregate the full padded zaug so the hidden state / final
            # store stays 128-lane dense; rows >= h_dim of the next layer's
            # W_aug are zero, so the padded lanes never leak into z.
            h = jnp.dot(alpha.astype(jnp.bfloat16), zaug.astype(jnp.bfloat16),
                        preferred_element_type=jnp.float32)          # [N, F_PAD]

        out_ref[...] = h                                   # lane-dense 128-wide store

    return kernel


def gat_stack_forward(attr, adjt, waugs, h_dim):
    """Run the fused GAT stack; returns [N, h_dim] node embeddings."""
    n = attr.shape[0]
    num_layers = len(waugs)
    f_pad = waugs[0].shape[1]
    kernel = make_gat_stack_kernel(num_layers, h_dim)
    vmem = pl.BlockSpec(memory_space=pltpu.MemorySpace.VMEM)
    # TODO(synk): for large N, add a destination-block grid (BlockSpec adj as
    # (T_dst, N), online softmax per dst tile) and an int8/bitpacked adjacency;
    # the test graph (N=16) fits entirely in VMEM so the gridless fused form is
    # strictly faster here.
    out = pl.pallas_call(
        kernel,
        out_shape=jax.ShapeDtypeStruct((n, f_pad), jnp.float32),
        in_specs=[vmem, vmem] + [vmem] * num_layers,
        out_specs=vmem,
        compiler_params=pltpu.CompilerParams(
            vmem_limit_bytes=32 * 1024 * 1024),
    )(attr, adjt, *waugs)
    return out[:, :h_dim]


def init_gat_params(key, in_dim, h_dim, num_hidden_layers):
    """Deterministic params: input layer (in->h) + num_hidden hidden layers (h->h)."""
    dims = [(in_dim, h_dim)] + [(h_dim, h_dim)] * num_hidden_layers
    params = []
    for (fi, fo) in dims:
        key, k1, k2, k3 = jax.random.split(key, 4)
        w = jax.random.normal(k1, (fi, fo), jnp.float32) * (1.0 / jnp.sqrt(fi))
        a_src = jax.random.normal(k2, (fo, 1), jnp.float32) * (1.0 / jnp.sqrt(2 * fo))
        a_dst = jax.random.normal(k3, (fo, 1), jnp.float32) * (1.0 / jnp.sqrt(2 * fo))
        params.append((w, a_src, a_dst))
    return params, key


def build_augmented_weights(params, h_dim):
    """Fold a_src/a_dst into the fc weight and pad lanes to a multiple of 128.

    columns [:h_dim] = W ; [h_dim] = W@a_src ; [h_dim+1] = W@a_dst ; rest zero.
    Layers > 0 also zero-pad the row (input) axis to F_PAD so the padded hidden
    state is consumed directly with no in-kernel slicing.
    """
    f_pad = _round_up(h_dim + 2, 128)
    waugs = []
    for li, (w, a_src, a_dst) in enumerate(params):
        fi, fo = w.shape
        cols = jnp.zeros((fi, f_pad), jnp.float32)
        cols = cols.at[:, :fo].set(w)
        cols = cols.at[:, fo].set((w @ a_src)[:, 0])
        cols = cols.at[:, fo + 1].set((w @ a_dst)[:, 0])
        if li == 0:
            waug = cols                                       # [in_dim, F_PAD]
        else:
            waug = jnp.zeros((f_pad, f_pad), jnp.float32).at[:fi, :].set(cols)
        waugs.append(waug.astype(jnp.bfloat16))
    return tuple(waugs), f_pad


@functools.partial(jax.jit, static_argnums=(3,))
def mymodel_forward(attr, adj, waugs, h_dim):
    """MyModel.forward(g): run the fused GAT stack over node attributes.

    attr : [N, in_dim] node attributes (g.ndata['attr'])
    adj  : [N, N] dense adjacency, adj[u, v] = 1.0 iff edge u -> v
    waugs: tuple of per-layer augmented bf16 weights (see build_augmented_weights)
    """
    adjt = jnp.transpose(adj)      # adjt[v, u] = 1 iff edge u -> v (dst-major)
    return gat_stack_forward(attr, adjt, waugs, h_dim)


if __name__ == "__main__":
    # Small synthetic graph: N=16 nodes, in_dim=8, h_dim=32, 1 hidden layer.
    N, IN_DIM, H_DIM, NUM_HIDDEN = 16, 8, 32, 1

    key = jax.random.PRNGKey(0)
    key, k_attr, k_adj = jax.random.split(key, 3)

    # node attributes (g.ndata['attr'])
    attr = jax.random.normal(k_attr, (N, IN_DIM), jnp.float32)

    # random directed graph + self loops so every node has an incoming edge
    adj = (jax.random.uniform(k_adj, (N, N)) < 0.3).astype(jnp.float32)
    adj = jnp.maximum(adj, jnp.eye(N, dtype=jnp.float32))

    params, key = init_gat_params(key, IN_DIM, H_DIM, NUM_HIDDEN)
    waugs, _ = build_augmented_weights(params, H_DIM)

    out = mymodel_forward(attr, adj, waugs, H_DIM)
    out = jax.block_until_ready(out)

    assert out.shape == (N, H_DIM), out.shape
    assert bool(jnp.all(jnp.isfinite(out)))
    print("KERNEL_OK")
</pallas_src>

<mosaic_0001>
module attributes {stable_mosaic.version = 11 : i64} {
  func.func @kernel(%arg0: memref<16x8xf32, #tpu.memory_space<vmem>>, %arg1: memref<16x16xf32, #tpu.memory_space<vmem>>, %arg2: memref<8x128xbf16, #tpu.memory_space<vmem>>, %arg3: memref<128x128xbf16, #tpu.memory_space<vmem>>, %arg4: memref<16x128xf32, #tpu.memory_space<vmem>>) attributes {dimension_semantics = [], scalar_prefetch = 0 : i64, scratch_operands = 0 : i64, tpu.core_type = #tpu.core_type<tc>} {
    %c0 = arith.constant 0 : index
    %c0_0 = arith.constant 0 : index
    %0 = vector.load %arg1[%c0, %c0_0] : memref<16x16xf32, #tpu.memory_space<vmem>>, vector<16x16xf32>
    %cst = arith.constant 0.000000e+00 : f32
    %1 = vector.broadcast %cst : f32 to vector<16x16xf32>
    %2 = arith.cmpf ogt, %0, %1 : vector<16x16xf32>
    %c0_1 = arith.constant 0 : index
    %c0_2 = arith.constant 0 : index
    %3 = vector.load %arg0[%c0_1, %c0_2] : memref<16x8xf32, #tpu.memory_space<vmem>>, vector<16x8xf32>
    %c0_3 = arith.constant 0 : index
    %c0_4 = arith.constant 0 : index
    %4 = vector.load %arg2[%c0_3, %c0_4] : memref<8x128xbf16, #tpu.memory_space<vmem>>, vector<8x128xbf16>
    %5 = arith.truncf %3 : vector<16x8xf32> to vector<16x8xbf16>
    %cst_5 = arith.constant dense<0.000000e+00> : vector<16x128xf32>
    %6 = tpu.matmul %5, %4, %cst_5 {dimension_numbers = #tpu.dot_dimension_numbers<[1], [0], [0], [1], [0, 0, 1, 1], [], []>} : vector<16x8xbf16>, vector<8x128xbf16>, vector<16x128xf32> -> vector<16x128xf32>
    %7 = vector.extract_strided_slice %6 {offsets = [0, 32], sizes = [16, 1], strides = [1, 1]} : vector<16x128xf32> to vector<16x1xf32>
    %8 = vector.extract_strided_slice %6 {offsets = [0, 33], sizes = [16, 1], strides = [1, 1]} : vector<16x128xf32> to vector<16x1xf32>
    %9 = tpu.transpose %7, [1, 0] : vector<16x1xf32> -> vector<1x16xf32>
    %10 = vector.broadcast %8 : vector<16x1xf32> to vector<16x16xf32>
    %11 = vector.broadcast %9 : vector<1x16xf32> to vector<16x16xf32>
    %12 = arith.addf %10, %11 : vector<16x16xf32>
    %cst_6 = arith.constant 0.000000e+00 : f32
    %13 = vector.broadcast %cst_6 : f32 to vector<16x16xf32>
    %14 = arith.cmpf ogt, %12, %13 : vector<16x16xf32>
    %cst_7 = arith.constant 0.00999999977 : f32
    %15 = vector.broadcast %cst_7 : f32 to vector<16x16xf32>
    %16 = arith.mulf %15, %12 : vector<16x16xf32>
    %17 = arith.select %14, %12, %16 : vector<16x16xi1>, vector<16x16xf32>
    %cst_8 = arith.constant -1.000000e+30 : f32
    %18 = vector.broadcast %cst_8 : f32 to vector<16x16xf32>
    %19 = arith.select %2, %17, %18 : vector<16x16xi1>, vector<16x16xf32>
    %cst_9 = arith.constant dense<0xFF800000> : vector<16xf32>
    %20 = vector.multi_reduction <maximumf>, %19, %cst_9 [1] : vector<16x16xf32> to vector<16xf32>
    %21 = vector.shape_cast %20 : vector<16xf32> to vector<16x1xf32>
    %22 = vector.broadcast %21 : vector<16x1xf32> to vector<16x16xf32>
    %23 = arith.subf %19, %22 : vector<16x16xf32>
    %24 = math.exp %23 : vector<16x16xf32>
    %cst_10 = arith.constant dense<0.000000e+00> : vector<16xf32>
    %25 = vector.multi_reduction <add>, %24, %cst_10 [1] : vector<16x16xf32> to vector<16xf32>
    %26 = vector.shape_cast %25 : vector<16xf32> to vector<16x1xf32>
    %cst_11 = arith.constant 1.000000e+00 : f32
    %27 = vector.broadcast %cst_11 : f32 to vector<16x1xf32>
    %28 = arith.divf %27, %26 : vector<16x1xf32>
    %29 = vector.broadcast %28 : vector<16x1xf32> to vector<16x16xf32>
    %30 = arith.mulf %24, %29 : vector<16x16xf32>
    %31 = arith.truncf %30 : vector<16x16xf32> to vector<16x16xbf16>
    %32 = arith.truncf %6 : vector<16x128xf32> to vector<16x128xbf16>
    %cst_12 = arith.constant dense<0.000000e+00> : vector<16x128xf32>
    %33 = tpu.matmul %31, %32, %cst_12 {dimension_numbers = #tpu.dot_dimension_numbers<[1], [0], [0], [1], [0, 0, 1, 1], [], []>} : vector<16x16xbf16>, vector<16x128xbf16>, vector<16x128xf32> -> vector<16x128xf32>
    %c0_13 = arith.constant 0 : index
    %c0_14 = arith.constant 0 : index
    %34 = vector.load %arg3[%c0_13, %c0_14] : memref<128x128xbf16, #tpu.memory_space<vmem>>, vector<128x128xbf16>
    %35 = arith.truncf %33 : vector<16x128xf32> to vector<16x128xbf16>
    %cst_15 = arith.constant dense<0.000000e+00> : vector<16x128xf32>
    %36 = tpu.matmul %35, %34, %cst_15 {dimension_numbers = #tpu.dot_dimension_numbers<[1], [0], [0], [1], [0, 0, 1, 1], [], []>} : vector<16x128xbf16>, vector<128x128xbf16>, vector<16x128xf32> -> vector<16x128xf32>
    %37 = vector.extract_strided_slice %36 {offsets = [0, 32], sizes = [16, 1], strides = [1, 1]} : vector<16x128xf32> to vector<16x1xf32>
    %38 = vector.extract_strided_slice %36 {offsets = [0, 33], sizes = [16, 1], strides = [1, 1]} : vector<16x128xf32> to vector<16x1xf32>
    %39 = tpu.transpose %37, [1, 0] : vector<16x1xf32> -> vector<1x16xf32>
    %40 = vector.broadcast %38 : vector<16x1xf32> to vector<16x16xf32>
    %41 = vector.broadcast %39 : vector<1x16xf32> to vector<16x16xf32>
    %42 = arith.addf %40, %41 : vector<16x16xf32>
    %cst_16 = arith.constant 0.000000e+00 : f32
    %43 = vector.broadcast %cst_16 : f32 to vector<16x16xf32>
    %44 = arith.cmpf ogt, %42, %43 : vector<16x16xf32>
    %cst_17 = arith.constant 0.00999999977 : f32
    %45 = vector.broadcast %cst_17 : f32 to vector<16x16xf32>
    %46 = arith.mulf %45, %42 : vector<16x16xf32>
    %47 = arith.select %44, %42, %46 : vector<16x16xi1>, vector<16x16xf32>
    %cst_18 = arith.constant -1.000000e+30 : f32
    %48 = vector.broadcast %cst_18 : f32 to vector<16x16xf32>
    %49 = arith.select %2, %47, %48 : vector<16x16xi1>, vector<16x16xf32>
    %cst_19 = arith.constant dense<0xFF800000> : vector<16xf32>
    %50 = vector.multi_reduction <maximumf>, %49, %cst_19 [1] : vector<16x16xf32> to vector<16xf32>
    %51 = vector.shape_cast %50 : vector<16xf32> to vector<16x1xf32>
    %52 = vector.broadcast %51 : vector<16x1xf32> to vector<16x16xf32>
    %53 = arith.subf %49, %52 : vector<16x16xf32>
    %54 = math.exp %53 : vector<16x16xf32>
    %cst_20 = arith.constant dense<0.000000e+00> : vector<16xf32>
    %55 = vector.multi_reduction <add>, %54, %cst_20 [1] : vector<16x16xf32> to vector<16xf32>
    %56 = vector.shape_cast %55 : vector<16xf32> to vector<16x1xf32>
    %cst_21 = arith.constant 1.000000e+00 : f32
    %57 = vector.broadcast %cst_21 : f32 to vector<16x1xf32>
    %58 = arith.divf %57, %56 : vector<16x1xf32>
    %59 = vector.broadcast %58 : vector<16x1xf32> to vector<16x16xf32>
    %60 = arith.mulf %54, %59 : vector<16x16xf32>
    %61 = arith.truncf %60 : vector<16x16xf32> to vector<16x16xbf16>
    %62 = arith.truncf %36 : vector<16x128xf32> to vector<16x128xbf16>
    %cst_22 = arith.constant dense<0.000000e+00> : vector<16x128xf32>
    %63 = tpu.matmul %61, %62, %cst_22 {dimension_numbers = #tpu.dot_dimension_numbers<[1], [0], [0], [1], [0, 0, 1, 1], [], []>} : vector<16x16xbf16>, vector<16x128xbf16>, vector<16x128xf32> -> vector<16x128xf32>
    %c0_23 = arith.constant 0 : index
    %c0_24 = arith.constant 0 : index
    %64 = vector.load %arg4[%c0_23, %c0_24] : memref<16x128xf32, #tpu.memory_space<vmem>>, vector<16x128xf32>
    tpu.vector_store %arg4[%c0_23, %c0_24], %63 {strides = array<i32>} : memref<16x128xf32, #tpu.memory_space<vmem>>, vector<16x128xf32>,
    return
  }
}

</mosaic_0001>

<bundles_post_ra>
// kernel: mymodel_forward.1
= control target key start
LH: loop header
LB: loop body
LE: loop exit
PB: predicated region body
PF: predicated region fallthrough
CT: control target
= control target key end

     0   :  { %9 = vsyncpa [#allocation3], 0  ;;  %s626_s0 = inlined_call_operand.vmem [shape: f32[16,8], index: 0, kind: input, shape index: {}]   ;;  %s627_s1 = inlined_call_operand.vmem [shape: f32[16,16], index: 1, kind: input, shape index: {}]   ;;  %s628_s2 = inlined_call_operand.vmem [shape: bf16[8,128], index: 2, kind: input, shape index: {}]   ;;  %s629_s3 = inlined_call_operand.hbm [shape: bf16[128,128], index: 3, kind: input, shape index: {}]   ;;  %s630_s4 = inlined_call_operand.hbm [shape: f32[16,128], index: 4, kind: output, shape index: {}]  }
   0x1   :  { %10 = vsyncpa [#allocation4], 0  ;;  %s21_s17 = sshll.u32 %s629_s3, 4  ;;  %s544_s18 = smov [#allocation2]   ;;  %s22_s17 = int_to_ptr.hbm [resolvable:$true] %s21_s17 }
   0x2   :  { %s23_s19 = sshll.u32 %s544_s18, 4  ;;  %s545_s20 = smov 64   ;;  %s24_s19 = int_to_ptr.vmem [resolvable:$true] %s23_s19 }
   0x3   :  { %s546_s21 = smov 4  }
   0x4   :  { %29 = dma.hbm_to_vmem [thread:$0]  %s22_s17, 1024, %s24_s19, [#allocation3], %s545_s20, %s545_s20, %s546_s21  }
   0x5   :  { %540 = dma.done.wait [#allocation3], 1024  }
   0x6   :  { %541 = vsyncadd [#allocation3], 4294966272  ;;  %v547_v0 = vmov 33   ;;  %vm47_vm0 = vcmask 1043456   ;;  %v41_v1 = vld [vmem:[%s628_s2] sm:$0xf] }
   0x7   :  { %474 = vset.pattern.permute.xlu1 %v547_v0  ;;  %475 = vset.pattern.permute.xlu0 %v547_v0  ;;  %v39_v2 = vld [vmem:[%s626_s0] sm:$0xff]  ;;  %v40_v3 = vld [vmem:[%s626_s0 + $0x8] sm:$0xff]  ;;  %v49_v4 = vsel %vm47_vm0, %v41_v1, 0  ;;  %vm43_vm1 = vcmask 64512   ;;  %s548_s27 = smov 96   ;;  %vm124_vm6 = vcmask 130048  }
   0x8   :  { %v42_v5 = vpack.c.bf16 %v40_v3, %v39_v2  ;;  %58 = vmatpush.bf16.msra.mxu0 %v49_v4  ;;  %v594_v14 = vld [vmem:[%s627_s1 + $0x8] sm:$0xff]  ;;  %v599_v15 = vld [vmem:[%s627_s1] sm:$0xff]  ;;  %v464_v37 = vld [vmem:[#allocation2 + $0x38] sm:$0xff]  ;;  %s549_s1 = smov [#allocation5]   ;;  %s409_s7 = sshll.u32 %s630_s4, 4  ;;  %s410_s7 = int_to_ptr.hbm [resolvable:$true] %s409_s7 }
   0x9   :  { %vm38_vm2 = vcmp.gt.f32.partialorder %v594_v14, 0.0  ;;  %vm37_vm3 = vcmp.gt.f32.partialorder %v599_v15, 0.0  ;;  %259 = vmatpush.bf16.msra.mxu2 %v464_v37  ;;  %v463_v38 = vld [vmem:[#allocation2 + $0x30] sm:$0xff]  ;;  %v462_v39 = vld [vmem:[#allocation2 + $0x28] sm:$0xff]  ;;  %v461_v42 = vld [vmem:[#allocation2 + $0x20] sm:$0xff]  ;;  %s407_s30 = sshll.u32 %s549_s1, 4  ;;  %s408_s30 = int_to_ptr.vmem [resolvable:$true] %s407_s30 }
   0xa   :  { %v460_v43 = vld [vmem:[#allocation2 + $0x18] sm:$0xff]  ;;  %v459_v3 = vld [vmem:[#allocation2 + $0x10] sm:$0xff]  ;;  %v458_v4 = vld [vmem:[#allocation2 + $0x8] sm:$0xff]  ;;  %s550_s8 = smov 128   ;;  %s551_s9 = smov 8  }
   0xb   :  { %422 = vmatmul.msk.bf16.vlgmr.msra.gmra.mxu0 %vm43_vm1, %v42_v5  ;;  %v457_v5 = vld [vmem:[#allocation2] sm:$0xff] }
   0xd   :  { %260 = vmatpush.bf16.msra.mxu2 %v463_v38 }
  0x11   :  { %261 = vmatpush.bf16.msra.mxu2 %v462_v39 }
  0x15   :  { %262 = vmatpush.bf16.msra.mxu2 %v461_v42 }
  0x19   :  { %263 = vmatpush.bf16.msra.mxu2 %v460_v43 }
  0x1d   :  { %264 = vmatpush.bf16.msra.mxu2 %v459_v3 }
  0x21   :  { %265 = vmatpush.bf16.msra.mxu2 %v458_v4 }
  0x25   :  { %266 = vmatpush.bf16.msra.mxu2 %v457_v5 }
  0x88   :  { %v60_v6 = vpop.f32.mrf.mxu0 }
  0x89   :  { %106 = vperm.xlu1 %474, %v60_v6   ;;  %67 = vrot.lane.b32.xlu0 %v60_v6, %s548_s27 }
  0x90   :  { %v62_v7 = vpop.f32.mrf.mxu0 }
  0x91   :  { %110 = vperm.xlu1 %474, %v62_v7   ;;  %69 = vrot.lane.b32.xlu0 %v62_v7, %s548_s27  ;;  %v176_v8 = vpack.c.bf16 %v62_v7, %v60_v6 }
  0x93   :  { %187 = vmatpush.bf16.msra.mxu1 %v176_v8 }
  0xfb   :  { %v68_v9 = vpop.permute.xlu0 %67  ;;  %v107_v11 = vpop.permute.xlu1 %106 }
  0xfc   :  { %73 = vxpose.xlu2.b32.start [1/2] (short) (narrow) %v68_v9, 8 }
 0x103   :  { %v70_v10 = vpop.permute.xlu0 %69  ;;  %v111_v16 = vpop.permute.xlu1 %110 }
 0x104   :  { %74 = vxpose.xlu2.b32.end [2/2] (short) (narrow) %v70_v10, 8 }
 0x195   :  { %v89_v12 = vpop.trf.xlu2 }
 0x196   :  { %v113_v13 = vperm.slane %v89_v12, 0 }
 0x198   :  { %v114_v17 = vadd.f32 %v113_v13, %v107_v11  ;;  %v115_v18 = vadd.f32 %v113_v13, %v111_v16 }
 0x19a   :  { %vm117_vm4 = vcmp.gt.f32.partialorder %v115_v18, 0.0  ;;  %v119_v19 = vmul.f32 0.01, %v115_v18  ;;  %vm116_vm5 = vcmp.gt.f32.partialorder %v114_v17, 0.0  ;;  %v118_v20 = vmul.f32 0.01, %v114_v17 }
 0x19c   :  { %v121_v21 = vsel %vm117_vm4, %v115_v18, %v119_v19  ;;  %v120_v22 = vsel %vm116_vm5, %v114_v17, %v118_v20 }
 0x19d   :  { %v123_v23 = vsel %vm38_vm2, %v121_v21, -1e+30  ;;  %v122_v24 = vsel %vm37_vm3, %v120_v22, -1e+30 }
 0x19e   :  { %v128_v25 = vsel %vm124_vm6, %v123_v23, -inf  ;;  %v125_v26 = vsel %vm124_vm6, %v122_v24, -inf }
 0x19f   :  { %129 = vmax.xlane.f32.xlu1 %v128_v25  ;;  %126 = vmax.xlane.f32.xlu0 %v125_v26 }
 0x212   :  { %v130_v27 = vpop.xlane.xlu1 %129  ;;  %v127_v28 = vpop.xlane.xlu0 %126 }
 0x213   :  { %v132_v29 = vsub.f32 %v123_v23, %v130_v27  ;;  %v131_v30 = vsub.f32 %v122_v24, %v127_v28 }
 0x215   :  { %v135_v31 = vmul.f32 1.442695, %v132_v29  ;;  %v133_v32 = vmul.f32 1.442695, %v131_v30 }
 0x217   :  { %476 = vpow2.f32 %v135_v31 }
 0x218   :  { %478 = vpow2.f32 %v133_v32 }
 0x21d   :  { %v477_v33 = vpop.eup %476 }
 0x21e   :  { %v479_v34 = vpop.eup %478  ;;  %v140_v35 = vsel %vm124_vm6, %v477_v33, 0.0 }
 0x21f   :  { %141 = vadd.xlane.f32.xlu0 %v140_v35  ;;  %v137_v36 = vsel %vm124_vm6, %v479_v34, 0.0 }
 0x220   :  { %138 = vadd.xlane.f32.xlu2 %v137_v36 }
 0x292   :  { %v142_v40 = vpop.xlane.xlu0 %141 }
 0x293   :  { %v139_v41 = vpop.xlane.xlu2 %138  ;;  %480 = vrcp.f32 %v142_v40  ;;  %v169_v50 = vand.u32 2147483648, %v142_v40  ;;  %v167_v53 = vand.u32 2147483647, %v142_v40  ;;  %vm163_vm9 = vweird.f32 %v142_v40 }
 0x294   :  { %482 = vrcp.f32 %v139_v41  ;;  %v154_v51 = vand.u32 2147483648, %v139_v41  ;;  %v152_v55 = vand.u32 2147483647, %v139_v41  ;;  %vm148_vm10 = vweird.f32 %v139_v41 }
 0x295   :  { %v170_v58 = vor.u32 1.1754944e-38, %v169_v50  ;;  %vm168_vm13 = vcmp.eq.f32.partialorder %v167_v53, 8.507059e+37 }
 0x296   :  { %v155_v59 = vor.u32 1.1754944e-38, %v154_v51  ;;  %vm153_vm14 = vcmp.eq.f32.partialorder %v152_v55, 8.507059e+37 }
 0x299   :  { %v481_v44 = vpop.eup %480 }
 0x29a   :  { %v483_v45 = vpop.eup %482  ;;  %v159_v46 = vmul.f32 %v481_v44, %v142_v40  ;;  %vm164_vm7 = vweird.f32 %v481_v44 }
 0x29b   :  { %v144_v47 = vmul.f32 %v483_v45, %v139_v41  ;;  %vm149_vm8 = vweird.f32 %v483_v45  ;;  %vm165_vm11 = vmor %vm163_vm9, %vm164_vm7 }
 0x29c   :  { %v160_v48 = vsub.f32 1.0, %v159_v46  ;;  %vm150_vm12 = vmor %vm148_vm10, %vm149_vm8 }
 0x29d   :  { %v145_v49 = vsub.f32 1.0, %v144_v47 }
 0x29e   :  { %v161_v52 = vmul.f32 %v481_v44, %v160_v48 }
 0x29f   :  { %v146_v54 = vmul.f32 %v483_v45, %v145_v49 }
 0x2a0   :  { %v162_v56 = vadd.f32 %v481_v44, %v161_v52 }
 0x2a1   :  { %v147_v57 = vadd.f32 %v483_v45, %v146_v54 }
 0x2a2   :  { %v166_v60 = vsel %vm165_vm11, %v481_v44, %v162_v56 }
 0x2a3   :  { %v151_v61 = vsel %vm150_vm12, %v483_v45, %v147_v57  ;;  %v171_v62 = vsel %vm168_vm13, %v170_v58, %v166_v60 }
 0x2a4   :  { %v156_v63 = vsel %vm153_vm14, %v155_v59, %v151_v61  ;;  %v174_v0 = vmul.f32 %v477_v33, %v171_v62 }
 0x2a5   :  { %v173_v1 = vmul.f32 %v479_v34, %v156_v63 }
 0x2a7   :  { %v175_v2 = vpack.c.bf16 %v174_v0, %v173_v1 }
 0x2a9   :  { %423 = vmatmul.msk.bf16.vlgmr.msra.gmra.mxu1 %vm124_vm6, %v175_v2 }
 0x326   :  { %v189_v6 = vpop.f32.mrf.mxu1 }
 0x32e   :  { %v191_v7 = vpop.f32.mrf.mxu1 }
 0x32f   :  { %v210_v8 = vpack.c.bf16 %v191_v7, %v189_v6 }
 0x331   :  { %267 = vmatmul.bf16.vlgmr.msra.gmra.mxu2 %v210_v8 }
 0x3b4   :  { %v268_v9 = vpop.f32.mrf.mxu2 }
 0x3b5   :  { %275 = vrot.lane.b32.xlu1 %v268_v9, %s548_s27 }
 0x3bc   :  { %v270_v10 = vpop.f32.mrf.mxu2 }
 0x3bd   :  { %314 = vperm.xlu1 %474, %v268_v9   ;;  %277 = vrot.lane.b32.xlu0 %v270_v10, %s548_s27  ;;  %v383_v11 = vpack.c.bf16 %v270_v10, %v268_v9 }
 0x3bf   :  { %394 = vmatpush.bf16.msra.mxu3 %v383_v11 }
 0x3c5   :  { %318 = vperm.xlu0 %475, %v270_v10  }
 0x427   :  { %v276_v12 = vpop.permute.xlu1 %275 }
 0x428   :  { %281 = vxpose.xlu1.b32.start [1/2] (short) (narrow) %v276_v12, 8 }
 0x42f   :  { %v278_v13 = vpop.permute.xlu0 %277  ;;  %v315_v16 = vpop.permute.xlu1 %314 }
 0x430   :  { %282 = vxpose.xlu1.b32.end [2/2] (short) (narrow) %v278_v13, 8 }
 0x437   :  { %v319_v19 = vpop.permute.xlu0 %318 }
 0x4cc   :  { %v297_v17 = vpop.trf.xlu1 }
 0x4cd   :  { %v321_v18 = vperm.slane %v297_v17, 0 }
 0x4cf   :  { %v322_v20 = vadd.f32 %v321_v18, %v315_v16  ;;  %v323_v21 = vadd.f32 %v321_v18, %v319_v19 }
 0x4d1   :  { %v326_v22 = vmul.f32 0.01, %v322_v20  ;;  %v327_v23 = vmul.f32 0.01, %v323_v21  ;;  %vm324_vm15 = vcmp.gt.f32.partialorder %v322_v20, 0.0  ;;  %vm325_vm0 = vcmp.gt.f32.partialorder %v323_v21, 0.0 }
 0x4d3   :  { %v328_v24 = vsel %vm324_vm15, %v322_v20, %v326_v22  ;;  %v329_v25 = vsel %vm325_vm0, %v323_v21, %v327_v23 }
 0x4d4   :  { %v330_v26 = vsel %vm37_vm3, %v328_v24, -1e+30  ;;  %v331_v27 = vsel %vm38_vm2, %v329_v25, -1e+30 }
 0x4d5   :  { %v332_v28 = vsel %vm124_vm6, %v330_v26, -inf  ;;  %v335_v29 = vsel %vm124_vm6, %v331_v27, -inf }
 0x4d6   :  { %333 = vmax.xlane.f32.xlu0 %v332_v28  ;;  %336 = vmax.xlane.f32.xlu2 %v335_v29 }
 0x549   :  { %v337_v30 = vpop.xlane.xlu2 %336  ;;  %v334_v31 = vpop.xlane.xlu0 %333 }
 0x54a   :  { %v339_v32 = vsub.f32 %v331_v27, %v337_v30  ;;  %v338_v33 = vsub.f32 %v330_v26, %v334_v31 }
 0x54c   :  { %v342_v34 = vmul.f32 1.442695, %v339_v32  ;;  %v340_v35 = vmul.f32 1.442695, %v338_v33 }
 0x54e   :  { %484 = vpow2.f32 %v342_v34 }
 0x54f   :  { %486 = vpow2.f32 %v340_v35 }
 0x554   :  { %v485_v36 = vpop.eup %484 }
 0x555   :  { %v487_v15 = vpop.eup %486  ;;  %v347_v37 = vsel %vm124_vm6, %v485_v36, 0.0 }
 0x556   :  { %348 = vadd.xlane.f32.xlu0 %v347_v37  ;;  %v344_v14 = vsel %vm124_vm6, %v487_v15, 0.0 }
 0x557   :  { %345 = vadd.xlane.f32.xlu2 %v344_v14 }
 0x5c9   :  { %v349_v38 = vpop.xlane.xlu0 %348 }
 0x5ca   :  { %v346_v39 = vpop.xlane.xlu2 %345  ;;  %488 = vrcp.f32 %v349_v38  ;;  %v376_v46 = vand.u32 2147483648, %v349_v38  ;;  %v374_v49 = vand.u32 2147483647, %v349_v38  ;;  %vm370_vm3 = vweird.f32 %v349_v38 }
 0x5cb   :  { %490 = vrcp.f32 %v346_v39  ;;  %v361_v47 = vand.u32 2147483648, %v346_v39  ;;  %v359_v51 = vand.u32 2147483647, %v346_v39  ;;  %vm355_vm4 = vweird.f32 %v346_v39 }
 0x5cc   :  { %v377_v54 = vor.u32 1.1754944e-38, %v376_v46  ;;  %vm375_vm8 = vcmp.eq.f32.partialorder %v374_v49, 8.507059e+37 }
 0x5cd   :  { %v362_v55 = vor.u32 1.1754944e-38, %v361_v47  ;;  %vm360_vm9 = vcmp.eq.f32.partialorder %v359_v51, 8.507059e+37 }
 0x5d0   :  { %v489_v40 = vpop.eup %488 }
 0x5d1   :  { %v491_v41 = vpop.eup %490  ;;  %v366_v42 = vmul.f32 %v489_v40, %v349_v38  ;;  %vm371_vm1 = vweird.f32 %v489_v40 }
 0x5d2   :  { %v351_v43 = vmul.f32 %v491_v41, %v346_v39  ;;  %vm356_vm2 = vweird.f32 %v491_v41  ;;  %vm372_vm5 = vmor %vm370_vm3, %vm371_vm1 }
 0x5d3   :  { %v367_v44 = vsub.f32 1.0, %v366_v42  ;;  %vm357_vm7 = vmor %vm355_vm4, %vm356_vm2 }
 0x5d4   :  { %v352_v45 = vsub.f32 1.0, %v351_v43 }
 0x5d5   :  { %v368_v48 = vmul.f32 %v489_v40, %v367_v44 }
 0x5d6   :  { %v353_v50 = vmul.f32 %v491_v41, %v352_v45 }
 0x5d7   :  { %v369_v52 = vadd.f32 %v489_v40, %v368_v48 }
 0x5d8   :  { %v354_v53 = vadd.f32 %v491_v41, %v353_v50 }
 0x5d9   :  { %v373_v56 = vsel %vm372_vm5, %v489_v40, %v369_v52 }
 0x5da   :  { %v358_v57 = vsel %vm357_vm7, %v491_v41, %v354_v53  ;;  %v378_v58 = vsel %vm375_vm8, %v377_v54, %v373_v56 }
 0x5db   :  { %v363_v59 = vsel %vm360_vm9, %v362_v55, %v358_v57  ;;  %v381_v60 = vmul.f32 %v485_v36, %v378_v58 }
 0x5dc   :  { %v380_v61 = vmul.f32 %v487_v15, %v363_v59 }
 0x5de   :  { %v382_v62 = vpack.c.bf16 %v381_v60, %v380_v61 }
 0x5e0   :  { %456 = vmatmul.msk.bf16.vlgmr.msra.gmra.mxu3 %vm124_vm6, %v382_v62 }
 0x663   :  { %v396_v63 = vpop.f32.mrf.mxu3 }
 0x664   :  { %401 = vst [vmem:[#allocation5] sm:$0xff] %v396_v63 }
 0x66b   :  { %v398_v0 = vpop.f32.mrf.mxu3 }
 0x66c   :  { %402 = vst [vmem:[#allocation5 + $0x8] sm:$0xff] %v398_v0 }
 0x66d   :  { %415 = dma.vmem_to_hbm [thread:$0]  %s408_s30, 256, %s410_s7, [#allocation4], %s550_s8, %s550_s8, %s551_s9  }
 0x66e   :  { %542 = dma.done.wait [#allocation4], 256  }
 0x66f   :  { %543 = vsyncadd [#allocation4], 4294967040 }
 0x670   :  { %420 = vsyncpa [#allocation3], 1 }
 0x671   :  { %421 = vsyncpa [#allocation4], 1 }

</bundles_post_ra>
